<compile_context>
chip_gen: v7x
topology: tpu7x:2x2x1
jax: 0.10.0
libtpu: 0.0.40
codegen_flags: <defaults>
</compile_context>

<pallas_src>
import functools

import jax
import jax.numpy as jnp
from jax.experimental import pallas as pl
from jax.experimental.pallas import tpu as pltpu


def _round_up(x, m):
    return ((x + m - 1) // m) * m


# --------------------------------------------------------------------------- #
# Kernel
# --------------------------------------------------------------------------- #
def ppo_agent_kernel(state_ref, w1_ref, b1_ref, w2_ref, b2_ref, sel_ref, out_ref):
    s = state_ref[...]                                                # (TB, S)

    # Fused first layers: [actor_h | critic_h] in one MXU matmul.
    h = jnp.dot(s, w1_ref[...], preferred_element_type=jnp.float32) + b1_ref[...]
    h = jnp.maximum(h, 0.0)                                           # ReLU, both heads

    # Fused second layers: block-diagonal (2H, OUT_PAD) weight.
    #   cols [0:action_dim]           -> actor logits (from h[:, :H])
    #   col  [action_dim]             -> critic value (from h[:, H:])
    #   cols [action_dim+1:OUT_PAD]   -> zero padding (ignored by consumers)
    z = jnp.dot(h, w2_ref[...], preferred_element_type=jnp.float32) + b2_ref[...]

    # Precomputed lane select: 1.0 -> tanh (policy cols), 0.0 -> identity (value).
    # Single lane-dense unmasked store of the whole (TB, OUT_PAD) slab.
    out_ref[...] = jnp.where(sel_ref[...] > 0.0, jnp.tanh(z), z).astype(out_ref.dtype)


# --------------------------------------------------------------------------- #
# Wrappers
# --------------------------------------------------------------------------- #
def ppo_agent_forward_padded(state, packed, *, tile_b=4096):
    """Fused actor+critic forward returning the lane-dense (B, OUT_PAD) slab.

    Columns [0:action_dim] hold tanh(policy logits); column [action_dim] holds
    the critic value; remaining columns are zero padding.  Consume/select lanes
    inside your own jit so the select fuses with downstream ops.
    """
    B, S = state.shape
    K2, out_pad = packed["w2"].shape                  # (2H, OUT_PAD)

    # Batch tile: multiple of 8 (f32 sublane), capped at tile_b, and capped at
    # ~B/2 so large batches always produce >=2 grid steps (v7x: 2 TensorCores).
    tb = min(int(tile_b), max(8, _round_up(pl.cdiv(B, 2), 8)))
    tb = _round_up(tb, 8)
    grid_b = pl.cdiv(B, tb)                            # ragged tail handled by Pallas

    param_bytes = 4 * (packed["w1"].size + packed["b1"].size +
                       packed["w2"].size + packed["b2"].size + packed["sel"].size)
    cost = pl.CostEstimate(
        flops=2 * B * (S * K2 + K2 * out_pad),
        transcendentals=B * out_pad,
        bytes_accessed=B * S * 4 + B * out_pad * 4 + param_bytes,
    )

    out = pl.pallas_call(
        ppo_agent_kernel,
        out_shape=jax.ShapeDtypeStruct((B, out_pad), jnp.float32),
        grid=(grid_b,),
        in_specs=[
            # state: tiled over batch, auto double-buffered.
            pl.BlockSpec((tb, S), lambda i: (i, 0)),
            # packed weights/biases/select: VMEM-resident across all grid steps.
            pl.BlockSpec((S, K2), lambda i: (0, 0)),
            pl.BlockSpec((1, K2), lambda i: (0, 0)),
            pl.BlockSpec((K2, out_pad), lambda i: (0, 0)),
            pl.BlockSpec((1, out_pad), lambda i: (0, 0)),
            pl.BlockSpec((1, out_pad), lambda i: (0, 0)),
        ],
        out_specs=pl.BlockSpec((tb, out_pad), lambda i: (i, 0)),
        compiler_params=pltpu.CompilerParams(
            dimension_semantics=("parallel",),
        ),
        cost_estimate=cost,
    )(state, packed["w1"], packed["b1"], packed["w2"], packed["b2"], packed["sel"])
    return out


def ppo_agent_forward(state, packed, *, action_dim, tile_b=4096):
    """Convenience wrapper preserving the PyTorch module signature:
    returns (policy_dist (B, action_dim), value (B, 1))."""
    out = ppo_agent_forward_padded(state, packed, tile_b=tile_b)
    policy = out[:, :action_dim]
    value = out[:, action_dim:action_dim + 1]
    return policy, value


# --------------------------------------------------------------------------- #
# Parameter construction / packing
# --------------------------------------------------------------------------- #
def init_params(key, state_dim, action_dim, hidden_dim):
    """PyTorch-style uniform fan-in init, stored as (in_features, out_features)."""
    ks = jax.random.split(key, 8)

    def linear(kw, kb, fan_in, fan_out):
        bound = 1.0 / jnp.sqrt(fan_in)
        w = jax.random.uniform(kw, (fan_in, fan_out), jnp.float32, -bound, bound)
        b = jax.random.uniform(kb, (1, fan_out), jnp.float32, -bound, bound)
        return w, b

    wa1, ba1 = linear(ks[0], ks[1], state_dim, hidden_dim)
    wa2, ba2 = linear(ks[2], ks[3], hidden_dim, action_dim)
    wc1, bc1 = linear(ks[4], ks[5], state_dim, hidden_dim)
    wc2, bc2 = linear(ks[6], ks[7], hidden_dim, 1)
    return dict(wa1=wa1, ba1=ba1, wa2=wa2, ba2=ba2,
                wc1=wc1, bc1=bc1, wc2=wc2, bc2=bc2)


def pack_params(raw, action_dim):
    """Host-side fusion of the 8 per-layer params into 5 kernel inputs."""
    wa1, ba1 = raw["wa1"], raw["ba1"]
    wa2, ba2 = raw["wa2"], raw["ba2"]
    wc1, bc1 = raw["wc1"], raw["bc1"]
    wc2, bc2 = raw["wc2"], raw["bc2"]
    _, hidden = wa1.shape

    out_pad = max(128, _round_up(action_dim + 1, 128))   # lane-dense output width

    # First layers, side by side: (S, 2H), (1, 2H).
    w1 = jnp.concatenate([wa1, wc1], axis=1)
    b1 = jnp.concatenate([ba1, bc1], axis=1)

    # Second layers, block-diagonal into a 128-lane padded slab.
    w2 = jnp.zeros((2 * hidden, out_pad), jnp.float32)
    w2 = w2.at[:hidden, :action_dim].set(wa2)
    w2 = w2.at[hidden:, action_dim:action_dim + 1].set(wc2)
    b2 = jnp.zeros((1, out_pad), jnp.float32)
    b2 = b2.at[:, :action_dim].set(ba2)
    b2 = b2.at[:, action_dim:action_dim + 1].set(bc2)

    # Precomputed tanh/identity lane select (hoisted out of the kernel).
    sel = jnp.zeros((1, out_pad), jnp.float32).at[:, :action_dim].set(1.0)

    return dict(w1=w1, b1=b1, w2=w2, b2=b2, sel=sel)


# --------------------------------------------------------------------------- #
# Test
# --------------------------------------------------------------------------- #
if __name__ == "__main__":
    batch, state_dim, action_dim, hidden_dim = 8, 16, 4, 32

    key = jax.random.PRNGKey(0)
    k_state, k_params = jax.random.split(key)

    state = jax.random.normal(k_state, (batch, state_dim), jnp.float32)
    raw = init_params(k_params, state_dim, action_dim, hidden_dim)
    packed = pack_params(raw, action_dim)

    fwd = jax.jit(functools.partial(ppo_agent_forward, action_dim=action_dim))
    policy_dist, value = fwd(state, packed)
    jax.block_until_ready((policy_dist, value))

    # Reference check against plain JAX (same math as the PyTorch module).
    ha = jnp.maximum(state @ raw["wa1"] + raw["ba1"], 0.0)
    ref_policy = jnp.tanh(ha @ raw["wa2"] + raw["ba2"])
    hc = jnp.maximum(state @ raw["wc1"] + raw["bc1"], 0.0)
    ref_value = hc @ raw["wc2"] + raw["bc2"]

    assert policy_dist.shape == (batch, action_dim)
    assert value.shape == (batch, 1)
    assert jnp.allclose(policy_dist, ref_policy, atol=1e-5, rtol=1e-5)
    assert jnp.allclose(value, ref_value, atol=1e-5, rtol=1e-5)

    print("KERNEL_OK")
</pallas_src>

<mosaic_0001>
module attributes {stable_mosaic.version = 11 : i64} {
  func.func @ppo_agent_kernel(%arg0: i32, %arg1: memref<8x16xf32, #tpu.memory_space<vmem>>, %arg2: memref<16x64xf32, #tpu.memory_space<vmem>>, %arg3: memref<1x64xf32, #tpu.memory_space<vmem>>, %arg4: memref<64x128xf32, #tpu.memory_space<vmem>>, %arg5: memref<1x128xf32, #tpu.memory_space<vmem>>, %arg6: memref<1x128xf32, #tpu.memory_space<vmem>>, %arg7: memref<8x128xf32, #tpu.memory_space<vmem>>) attributes {dimension_semantics = [#tpu.dimension_semantics<parallel>], iteration_bounds = array<i64: 1>, scalar_prefetch = 0 : i64, scratch_operands = 0 : i64, tpu.core_type = #tpu.core_type<tc>, window_params = [{transform_indices = @transform_0, window_bounds = array<i64: 8, 16>}, {pipeline_mode = #tpu.pipeline_mode<synchronous>, transform_indices = @transform_1, window_bounds = array<i64: 16, 64>}, {pipeline_mode = #tpu.pipeline_mode<synchronous>, transform_indices = @transform_2, window_bounds = array<i64: 1, 64>}, {pipeline_mode = #tpu.pipeline_mode<synchronous>, transform_indices = @transform_3, window_bounds = array<i64: 64, 128>}, {pipeline_mode = #tpu.pipeline_mode<synchronous>, transform_indices = @transform_4, window_bounds = array<i64: 1, 128>}, {pipeline_mode = #tpu.pipeline_mode<synchronous>, transform_indices = @transform_5, window_bounds = array<i64: 1, 128>}, {transform_indices = @transform_6, window_bounds = array<i64: 8, 128>}]} {
    %c0 = arith.constant 0 : index
    %c0_0 = arith.constant 0 : index
    %0 = vector.load %arg1[%c0, %c0_0] : memref<8x16xf32, #tpu.memory_space<vmem>>, vector<8x16xf32>
    %c0_1 = arith.constant 0 : index
    %c0_2 = arith.constant 0 : index
    %1 = vector.load %arg2[%c0_1, %c0_2] : memref<16x64xf32, #tpu.memory_space<vmem>>, vector<16x64xf32>
    %cst = arith.constant dense<0.000000e+00> : vector<8x64xf32>
    %2 = tpu.matmul %0, %1, %cst {dimension_numbers = #tpu.dot_dimension_numbers<[1], [0], [0], [1], [0, 0, 1, 1], [], []>} : vector<8x16xf32>, vector<16x64xf32>, vector<8x64xf32> -> vector<8x64xf32>
    %c0_3 = arith.constant 0 : index
    %c0_4 = arith.constant 0 : index
    %3 = vector.load %arg3[%c0_3, %c0_4] : memref<1x64xf32, #tpu.memory_space<vmem>>, vector<1x64xf32>
    %4 = vector.broadcast %3 : vector<1x64xf32> to vector<8x64xf32>
    %5 = arith.addf %2, %4 : vector<8x64xf32>
    %cst_5 = arith.constant 0.000000e+00 : f32
    %6 = vector.broadcast %cst_5 : f32 to vector<8x64xf32>
    %7 = arith.maximumf %5, %6 : vector<8x64xf32>
    %c0_6 = arith.constant 0 : index
    %c0_7 = arith.constant 0 : index
    %8 = vector.load %arg4[%c0_6, %c0_7] : memref<64x128xf32, #tpu.memory_space<vmem>>, vector<64x128xf32>
    %cst_8 = arith.constant dense<0.000000e+00> : vector<8x128xf32>
    %9 = tpu.matmul %7, %8, %cst_8 {dimension_numbers = #tpu.dot_dimension_numbers<[1], [0], [0], [1], [0, 0, 1, 1], [], []>} : vector<8x64xf32>, vector<64x128xf32>, vector<8x128xf32> -> vector<8x128xf32>
    %c0_9 = arith.constant 0 : index
    %c0_10 = arith.constant 0 : index
    %10 = vector.load %arg5[%c0_9, %c0_10] : memref<1x128xf32, #tpu.memory_space<vmem>>, vector<1x128xf32>
    %11 = vector.broadcast %10 : vector<1x128xf32> to vector<8x128xf32>
    %12 = arith.addf %9, %11 : vector<8x128xf32>
    %c0_11 = arith.constant 0 : index
    %c0_12 = arith.constant 0 : index
    %13 = vector.load %arg6[%c0_11, %c0_12] : memref<1x128xf32, #tpu.memory_space<vmem>>, vector<1x128xf32>
    %cst_13 = arith.constant 0.000000e+00 : f32
    %14 = vector.broadcast %cst_13 : f32 to vector<1x128xf32>
    %15 = arith.cmpf ogt, %13, %14 : vector<1x128xf32>
    %16 = math.tanh %12 : vector<8x128xf32>
    %17 = vector.shape_cast %15 : vector<1x128xi1> to vector<1x128xi1>
    %18 = vector.broadcast %17 : vector<1x128xi1> to vector<8x128xi1>
    %19 = arith.select %18, %16, %12 : vector<8x128xi1>, vector<8x128xf32>
    %c0_14 = arith.constant 0 : index
    %c0_15 = arith.constant 0 : index
    %20 = vector.load %arg7[%c0_14, %c0_15] : memref<8x128xf32, #tpu.memory_space<vmem>>, vector<8x128xf32>
    tpu.vector_store %arg7[%c0_14, %c0_15], %19 {strides = array<i32>} : memref<8x128xf32, #tpu.memory_space<vmem>>, vector<8x128xf32>,
    return
  }
  func.func @transform_0(%arg0: i32) -> (i32, i32) {
    %c0_i32 = arith.constant 0 : i32
    %c0_i32_0 = arith.constant 0 : i32
    return %arg0, %c0_i32 : i32, i32
  }
  func.func @transform_1(%arg0: i32) -> (i32, i32) {
    %c0_i32 = arith.constant 0 : i32
    %c0_i32_0 = arith.constant 0 : i32
    %c0_i32_1 = arith.constant 0 : i32
    return %c0_i32, %c0_i32_0 : i32, i32
  }
  func.func @transform_2(%arg0: i32) -> (i32, i32) {
    %c0_i32 = arith.constant 0 : i32
    %c0_i32_0 = arith.constant 0 : i32
    %c0_i32_1 = arith.constant 0 : i32
    return %c0_i32, %c0_i32_0 : i32, i32
  }
  func.func @transform_3(%arg0: i32) -> (i32, i32) {
    %c0_i32 = arith.constant 0 : i32
    %c0_i32_0 = arith.constant 0 : i32
    %c0_i32_1 = arith.constant 0 : i32
    return %c0_i32, %c0_i32_0 : i32, i32
  }
  func.func @transform_4(%arg0: i32) -> (i32, i32) {
    %c0_i32 = arith.constant 0 : i32
    %c0_i32_0 = arith.constant 0 : i32
    %c0_i32_1 = arith.constant 0 : i32
    return %c0_i32, %c0_i32_0 : i32, i32
  }
  func.func @transform_5(%arg0: i32) -> (i32, i32) {
    %c0_i32 = arith.constant 0 : i32
    %c0_i32_0 = arith.constant 0 : i32
    %c0_i32_1 = arith.constant 0 : i32
    return %c0_i32, %c0_i32_0 : i32, i32
  }
  func.func @transform_6(%arg0: i32) -> (i32, i32) {
    %c0_i32 = arith.constant 0 : i32
    %c0_i32_0 = arith.constant 0 : i32
    return %arg0, %c0_i32 : i32, i32
  }
}

</mosaic_0001>

<bundles_post_ra>
// kernel: ppo_agent_forward.1
= control target key start
LH: loop header
LB: loop body
LE: loop exit
PB: predicated region body
PF: predicated region fallthrough
CT: control target
= control target key end

     0   :  { %11 = vsyncpa [#allocation3], 0  ;;  %s489_s0 = inlined_call_operand.hbm [shape: f32[8,16], index: 0, kind: input, shape index: {}]   ;;  %s490_s1 = inlined_call_operand.hbm [shape: f32[16,64], index: 1, kind: input, shape index: {}]   ;;  %s491_s2 = inlined_call_operand.vmem [shape: f32[1,64], index: 2, kind: input, shape index: {}]   ;;  %s492_s3 = inlined_call_operand.hbm [shape: f32[64,128], index: 3, kind: input, shape index: {}]   ;;  %s493_s4 = inlined_call_operand.vmem [shape: f32[1,128], index: 4, kind: input, shape index: {}]   ;;  %s494_s5 = inlined_call_operand.vmem [shape: f32[1,128], index: 5, kind: input, shape index: {}]   ;;  %s495_s6 = inlined_call_operand.vmem [shape: f32[8,128], index: 6, kind: output, shape index: {}]  }
   0x1   :  { %12 = vsyncpa [#allocation5], 0  ;;  %s391_s21 = smov [#allocation4]   ;;  %s321_s25 = scalar_lea.hbm %s490_s1, 256 }
   0x2   :  { %s28_s22 = sshll.u32 %s391_s21, 4  ;;  %p322_p0 = scmp.ne.s32.totalorder %s490_s1, %s321_s25  ;;  %s29_s22 = int_to_ptr.vmem [resolvable:$true] %s28_s22 }
   0x3   :  { %p325_p1 = scmp.lt.u32.totalorder %s321_s25, %s490_s1 }
   0x5   :  { %p327_p2 = pnand %p325_p1, %p322_p0 }
   0x7   :  { %330 = shalt.err (!%p327_p2)
}
   0x8   :  { %s331_s30 = scalar_lea.vmem %s29_s22, 256  ;;  %p336_p4 = scmp.lt.s32.totalorder %s29_s22, %s29_s22 }
   0x9   :  { %p332_p3 = scmp.ne.s32.totalorder %s29_s22, %s331_s30  ;;  %p337_p5 = scmp.lt.s32.totalorder %s331_s30, %s331_s30 }
   0xb   :  { %p338_p6 = por %p337_p5, %p336_p4 }
   0xd   :  { %p339_p7 = pnand %p338_p6, %p332_p3 }
   0xf   :  { %342 = shalt.err (!%p339_p7)
}
  0x10   :  { %s392_s7 = smov 128   ;;  %s393_s8 = smov 8  }
  0x11   :  { %34 = dma.hbm_to_vmem [thread:$0]  %s490_s1, 256, %s29_s22, [#allocation5], %s392_s7, %s392_s7, %s393_s8  }
  0x12   :  { %s394_s11 = smov [#allocation2]   ;;  %s395_s13 = smov [#allocation6]  }
  0x13   :  { %s19_s12 = sshll.u32 %s394_s11, 4  ;;  %s42_s14 = sshll.u32 %s395_s13, 4  ;;  %s20_s12 = int_to_ptr.vmem [resolvable:$true] %s19_s12  ;;  %s43_s14 = int_to_ptr.vmem [resolvable:$true] %s42_s14 }
  0x14   :  { %s343_s17 = scalar_lea.hbm %s489_s0, 128 }
  0x15   :  { %p344_p8 = scmp.ne.s32.totalorder %s489_s0, %s343_s17  ;;  %p347_p9 = scmp.lt.u32.totalorder %s343_s17, %s489_s0 }
  0x17   :  { %p349_p10 = pnand %p347_p9, %p344_p8 }
  0x19   :  { %352 = shalt.err (!%p349_p10)
}
  0x1a   :  { %s353_s1 = scalar_lea.vmem %s20_s12, 128  ;;  %p358_p12 = scmp.lt.s32.totalorder %s20_s12, %s20_s12 }
  0x1b   :  { %p354_p11 = scmp.ne.s32.totalorder %s20_s12, %s353_s1  ;;  %p359_p13 = scmp.lt.s32.totalorder %s353_s1, %s353_s1 }
  0x1d   :  { %p360_p0 = por %p359_p13, %p358_p12 }
  0x1f   :  { %p361_p1 = pnand %p360_p0, %p354_p11 }
  0x21   :  { %364 = shalt.err (!%p361_p1)
}
  0x22   :  { %22 = dma.hbm_to_vmem [thread:$0]  %s489_s0, 128, %s20_s12, [#allocation3]  }
  0x23   :  { %s365_s26 = scalar_lea.hbm %s492_s3, 1024 }
  0x24   :  { %p366_p2 = scmp.ne.s32.totalorder %s492_s3, %s365_s26  ;;  %p369_p3 = scmp.lt.u32.totalorder %s365_s26, %s492_s3 }
  0x26   :  { %p371_p4 = pnand %p369_p3, %p366_p2 }
  0x28   :  { %374 = shalt.err (!%p371_p4)
}
  0x29   :  { %s375_s9 = scalar_lea.vmem %s43_s14, 1024  ;;  %p380_p6 = scmp.lt.s32.totalorder %s43_s14, %s43_s14 }
  0x2a   :  { %p376_p5 = scmp.ne.s32.totalorder %s43_s14, %s375_s9  ;;  %p381_p7 = scmp.lt.s32.totalorder %s375_s9, %s375_s9 }
  0x2c   :  { %p382_p8 = por %p381_p7, %p380_p6 }
  0x2e   :  { %p383_p9 = pnand %p382_p8, %p376_p5 }
  0x30   :  { %386 = shalt.err (!%p383_p9)
}
  0x31   :  { %48 = dma.hbm_to_vmem [thread:$0]  %s492_s3, 1024, %s43_s14, [#allocation5], %s392_s7, %s392_s7, %s393_s8  }
  0x32   :  { %387 = dma.done.wait [#allocation3], 128  }
  0x33   :  { %388 = vsyncadd [#allocation3], 4294967168 }
  0x34   :  { %389 = dma.done.wait [#allocation5], 1280  }
  0x35   :  { %390 = vsyncadd [#allocation5], 4294966016  ;;  %v396_v0 = vmov 0.0|0.0   ;;  %vm397_vm0 = vmmov 0   ;;  %v398_v1 = vmov 0.0   ;;  %v63_v2 = vld [vmem:[#allocation4] sm:$0xff]  ;;  %v240_v23 = vlaneseq }
  0x36   :  { %295 = vmatprep.subr.bf16.mxu0 %v396_v0  ;;  %273 = vmatprep.mubr.msk.f32.mxu0 %vm397_vm0, %v398_v1  ;;  %v64_v3 = vld [vmem:[#allocation4 + $0x8] sm:$0xff]  ;;  %v147_v5 = vld [vmem:[#allocation6] sm:$0xff]  ;;  %v148_v6 = vld [vmem:[#allocation6 + $0x8] sm:$0xff]  ;;  %vm72_vm1 = vcmask 130048   ;;  %vm162_vm2 = vcmask 523264   ;;  %v399_v31 = vmov 0  }
  0x37   :  { %298 = vmatprep.subr.bf16.mxu1 %v396_v0  ;;  %292 = vmatprep.mubr.msk.f32.mxu1 %vm397_vm0, %v398_v1  ;;  %v296_v4 = vpack.c.bf16 %v64_v3, %v63_v2  ;;  %v149_v7 = vld [vmem:[#allocation6 + $0x10] sm:$0xff]  ;;  %v299_v8 = vpack.c.bf16 %v148_v6, %v147_v5  ;;  %v150_v9 = vld [vmem:[#allocation6 + $0x18] sm:$0xff]  ;;  %v62_v10 = vld [vmem:[#allocation2] sm:$0xff]  ;;  %v241_v26 = vshrl.u32 %v240_v23, 7 }
  0x38   :  { %v302_v11 = vpack.c.bf16 %v150_v9, %v149_v7  ;;  %v151_v12 = vld [vmem:[#allocation6 + $0x20] sm:$0xff]  ;;  %v152_v13 = vld [vmem:[#allocation6 + $0x28] sm:$0xff]  ;;  %v153_v15 = vld [vmem:[#allocation6 + $0x30] sm:$0xff] }
  0x39   :  { %297 = vmatpush3.bf16.msra.mxu0 %v296_v4  ;;  %300 = vmatpush3.bf16.msra.mxu1 %v299_v8  ;;  %v305_v14 = vpack.c.bf16 %v152_v13, %v151_v12  ;;  %v154_v16 = vld [vmem:[#allocation6 + $0x38] sm:$0xff]  ;;  %v253_v18 = vld [vmem:[%s491_s2] ss:$0 sm:$0xff]  ;;  %v242_v30 = vsub.s32 0, %v241_v26 }
  0x3a   :  { %301 = vmatprep.subr.bf16.mxu1 %v396_v0  ;;  %v308_v17 = vpack.c.bf16 %v154_v16, %v153_v15  ;;  %v255_v24 = vld [vmem:[%s493_s4] ss:$0 sm:$0xff] }
  0x3b   :  { %v236_v25 = vld [vmem:[%s494_s5] sm:$0x1] }
  0x3c   :  { %274 = vmatmul.mubr.msk.f32.vlgmr.msra.gmra.mrb[0].mxu0 %vm72_vm1, %v62_v10  ;;  %vm237_vm3 = vcmp.gt.f32.partialorder %v236_v25, 0.0 }
  0x3d   :  { %303 = vmatpush3.bf16.msra.mxu1 %v302_v11  ;;  %v239_v32 = vsel %vm237_vm3, 1, %v399_v31 }
  0x3e   :  { %304 = vmatprep.subr.bf16.mxu1 %v396_v0  ;;  %v243_v33 = vrot.slane %v239_v32, %v242_v30 }
  0x40   :  { %vm244_vm4 = vcmp.eq.s32.totalorder %v243_v33, 1 }
  0x41   :  { %306 = vmatpush3.bf16.msra.mxu1 %v305_v14 }
  0x42   :  { %307 = vmatprep.subr.bf16.mxu1 %v396_v0 }
  0x45   :  { %309 = vmatpush3.bf16.msra.mxu1 %v308_v17 }
 0x10f   :  { %v142_v19 = vpop.f32.mrb[0].mxu0 }
 0x110   :  { %v143_v20 = vadd.f32 %v253_v18, %v142_v19  ;;  %v275_v21 = vpop.f32.mrb[1].mxu0 }
 0x112   :  { %v146_v22 = vmax.f32 %v143_v20, 0.0 }
 0x114   :  { %293 = vmatmul.mubr.msk.f32.vlgmr.msra.gmra.mrb[0].mxu1 %vm162_vm2, %v146_v22 }
 0x1e7   :  { %v232_v27 = vpop.f32.mrb[0].mxu1 }
 0x1e8   :  { %v233_v28 = vadd.f32 %v255_v24, %v232_v27  ;;  %v294_v29 = vpop.f32.mrb[1].mxu1 }
 0x1ea   :  { %319 = vtanh.f32 %v233_v28 }
 0x1f4   :  { %v320_v34 = vpop.eup %319 }
 0x1f5   :  { %v245_v35 = vsel %vm244_vm4, %v320_v34, %v233_v28 }
 0x1f6   :  { %246 = vst [vmem:[%s495_s6] sm:$0xff] %v245_v35 }
 0x1f7   :  { %251 = vsyncpa [#allocation3], 1 }
 0x1f8   :  { %252 = vsyncpa [#allocation5], 1 }

</bundles_post_ra>
